<compile_context>
chip_gen: v7x
topology: tpu7x:2x2x1
jax: 0.10.0
libtpu: 0.0.40
codegen_flags: <defaults>
</compile_context>

<pallas_src>
import functools
import math

import jax
import jax.numpy as jnp
from jax import lax
from jax.experimental import pallas as pl
from jax.experimental.pallas import tpu as pltpu


def _mhsa_kernel(x_ref, wq_ref, bq_ref, wk_ref, bk_ref, wv_ref, bv_ref,
                 wp_ref, bp_ref, o_ref, k_scr, v_scr, *, n_head, tq):
    """One (batch, query-tile) grid step of the fused MHSA forward.

    x_ref : (1, T, C)  full sequence of this batch element (compute dtype)
    w*_ref: (C, C)     weights, (in, out) layout, compute dtype (VMEM-resident)
    b*_ref: (1, C)     biases in f32 (1/sqrt(D) already folded into wq/bq)
    o_ref : (1, tq, C) output rows of this query tile
    k_scr, v_scr: (T, C) VMEM scratch holding K / V projections; written only
        at qi == 0 and reused for every query tile of the same batch element.
    """
    qi = pl.program_id(1)
    x = x_ref[0]                                    # (T, C)
    cdt = x.dtype
    T, C = x.shape
    D = C // n_head

    # ---- K/V projections: computed once per batch element ------------------
    @pl.when(qi == 0)
    def _():
        k = jnp.dot(x, wk_ref[...], preferred_element_type=jnp.float32) + bk_ref[...]
        v = jnp.dot(x, wv_ref[...], preferred_element_type=jnp.float32) + bv_ref[...]
        k_scr[...] = k.astype(cdt)
        v_scr[...] = v.astype(cdt)

    # ---- Q projection for this query tile (scale folded into Wq/bq) --------
    if tq == T:
        xq = x
    else:
        row0 = pl.multiple_of(qi * tq, tq)
        xq = x_ref[0, pl.ds(row0, tq), :]           # (tq, C)
    q = (jnp.dot(xq, wq_ref[...], preferred_element_type=jnp.float32)
         + bq_ref[...]).astype(cdt)                 # (tq, C)

    # ---- Per-head attention; output projection fused into the head loop ----
    # y @ Wp == sum_h y_h @ Wp[h*D:(h+1)*D, :], so each head's (tq, T) logits
    # die immediately and no concatenate / head-merge relayout is required.
    acc = jnp.zeros((tq, C), jnp.float32)
    for h in range(n_head):
        lo = h * D
        qh = q[:, lo:lo + D]                        # (tq, D)
        kh = k_scr[:, lo:lo + D]                    # (T,  D)
        vh = v_scr[:, lo:lo + D]                    # (T,  D)

        s = lax.dot_general(qh, kh, (((1,), (1,)), ((), ())),
                            preferred_element_type=jnp.float32)   # (tq, T)
        s = s - jnp.max(s, axis=-1, keepdims=True)
        p = jnp.exp(s)
        inv = pl.reciprocal(jnp.sum(p, axis=-1, keepdims=True), approx=True)
        att = (p * inv).astype(cdt)
        # dropout(p=0.1) -> identity (inference / eval forward)

        yh = jnp.dot(att, vh, preferred_element_type=jnp.float32).astype(cdt)  # (tq, D)
        acc = acc + jnp.dot(yh, wp_ref[lo:lo + D, :],
                            preferred_element_type=jnp.float32)                # (tq, C)

    o_ref[0] = (acc + bp_ref[...]).astype(o_ref.dtype)


def multi_head_self_attention(x, wq, bq, wk, bk, wv, bv, wp, bp, *,
                              n_head, tq=None, compute_dtype=jnp.bfloat16):
    """x: (B, T, C). Weights are (C, C) in (in, out) layout; biases (C,)."""
    B, T, C = x.shape
    assert C % n_head == 0, "n_embd must be divisible by n_head"
    D = C // n_head
    scale = 1.0 / math.sqrt(D)
    out_dtype = x.dtype
    cdt = jnp.dtype(compute_dtype if compute_dtype is not None else x.dtype)

    # Fold 1/sqrt(D) into the query projection once (wrapper-side) instead of
    # scaling every (tq, T) score block inside the kernel.
    wq_c = (wq.astype(jnp.float32) * scale).astype(cdt)
    wk_c = wk.astype(cdt)
    wv_c = wv.astype(cdt)
    wp_c = wp.astype(cdt)
    bq2 = (bq.astype(jnp.float32) * scale).reshape(1, C)
    bk2 = bk.astype(jnp.float32).reshape(1, C)
    bv2 = bv.astype(jnp.float32).reshape(1, C)
    bp2 = bp.astype(jnp.float32).reshape(1, C)
    xc = x.astype(cdt)

    ci = jnp.dtype(cdt).itemsize
    oi = jnp.dtype(out_dtype).itemsize
    sublane = 16 if ci == 2 else 8

    # Chip-aware VMEM budget (v7x = 64 MiB, v5e/v6e = 128 MiB per TensorCore).
    vmem_cap = 64 * 2**20
    try:
        vmem_cap = int(pltpu.get_tpu_info().vmem_capacity_bytes)
    except Exception:
        pass

    def est_vmem(tq_):
        blocks = 2 * T * C * ci + 2 * tq_ * C * oi       # x block + out block (dbl buf)
        weights = 4 * C * C * ci + 4 * C * 4              # single-buffered (VMEM space)
        scratch = 2 * T * C * ci                          # K/V scratch
        interm = (2 * tq_ * C + 3 * tq_ * T) * 4          # q, acc, logits/probs (f32)
        return blocks + weights + scratch + interm

    # Query-row tile: largest 128-aligned candidate (or full T) fitting budget.
    if tq is None:
        cands = sorted({c for c in (T, 512, 256, 128)
                        if c <= T and T % c == 0
                        and (c == T or c % sublane == 0)}, reverse=True)
        tq = cands[-1]
        for c in cands:
            if est_vmem(c) <= vmem_cap - 8 * 2**20:
                tq = c
                break
    assert T % tq == 0 and (tq == T or tq % sublane == 0)
    nq = T // tq

    vmem_limit = int(min(vmem_cap - 4 * 2**20,
                         max(32 * 2**20, 2 * est_vmem(tq))))

    # Advisory cost estimate for XLA scheduling around the call.
    flops = int(B * (8 * T * C * C + 4 * T * T * C))
    transcendentals = int(B * n_head * T * (T + 1))       # exp + reciprocal
    bytes_accessed = int(B * T * C * (ci + oi) + 4 * C * C * ci + 4 * C * 4)
    cost = pl.CostEstimate(flops=flops, transcendentals=transcendentals,
                           bytes_accessed=bytes_accessed)

    kernel = functools.partial(_mhsa_kernel, n_head=n_head, tq=tq)
    resident = pl.BlockSpec(memory_space=pltpu.MemorySpace.VMEM)  # single-buffered

    out = pl.pallas_call(
        kernel,
        out_shape=jax.ShapeDtypeStruct((B, T, C), out_dtype),
        grid_spec=pltpu.PrefetchScalarGridSpec(
            num_scalar_prefetch=0,
            grid=(B, nq),
            in_specs=[
                pl.BlockSpec((1, T, C), lambda b, qi: (b, 0, 0)),  # x (resident per b)
                resident, resident,    # Wq, bq
                resident, resident,    # Wk, bk
                resident, resident,    # Wv, bv
                resident, resident,    # Wp, bp
            ],
            out_specs=pl.BlockSpec((1, tq, C), lambda b, qi: (b, qi, 0)),
            scratch_shapes=[pltpu.VMEM((T, C), cdt),   # K
                            pltpu.VMEM((T, C), cdt)],  # V
        ),
        compiler_params=pltpu.CompilerParams(
            dimension_semantics=("parallel", "arbitrary"),
            vmem_limit_bytes=vmem_limit),
        cost_estimate=cost,
    )(xc, wq_c, bq2, wk_c, bk2, wv_c, bv2, wp_c, bp2)

    return out


def _init_params(key, n_embd, dtype=jnp.float32):
    """Mimics torch.nn.Linear default init U(-1/sqrt(fan_in), +)."""
    lim = 1.0 / math.sqrt(n_embd)
    keys = jax.random.split(key, 8)
    wq = jax.random.uniform(keys[0], (n_embd, n_embd), dtype, -lim, lim)
    bq = jax.random.uniform(keys[1], (n_embd,), dtype, -lim, lim)
    wk = jax.random.uniform(keys[2], (n_embd, n_embd), dtype, -lim, lim)
    bk = jax.random.uniform(keys[3], (n_embd,), dtype, -lim, lim)
    wv = jax.random.uniform(keys[4], (n_embd, n_embd), dtype, -lim, lim)
    bv = jax.random.uniform(keys[5], (n_embd,), dtype, -lim, lim)
    wp = jax.random.uniform(keys[6], (n_embd, n_embd), dtype, -lim, lim)
    bp = jax.random.uniform(keys[7], (n_embd,), dtype, -lim, lim)
    return wq, bq, wk, bk, wv, bv, wp, bp


def _reference(x, wq, bq, wk, bk, wv, bv, wp, bp, n_head):
    """Pure-JAX mirror of the PyTorch forward (dropout = identity)."""
    B, T, C = x.shape
    D = C // n_head
    q = (x @ wq + bq).reshape(B, T, n_head, D).transpose(0, 2, 1, 3)
    k = (x @ wk + bk).reshape(B, T, n_head, D).transpose(0, 2, 1, 3)
    v = (x @ wv + bv).reshape(B, T, n_head, D).transpose(0, 2, 1, 3)
    att = jax.nn.softmax((q @ jnp.swapaxes(k, -2, -1)) / math.sqrt(D), axis=-1)
    y = (att @ v).transpose(0, 2, 1, 3).reshape(B, T, C)
    return y @ wp + bp


if __name__ == "__main__":
    # --- Run A: f32 compute path at small module-consistent shapes ----------
    B, T, C, n_head = 2, 8, 32, 4        # batch, seq, n_embd, heads (head_dim 8)
    kx, kp = jax.random.split(jax.random.PRNGKey(0))
    x = jax.random.normal(kx, (B, T, C), jnp.float32)
    params = _init_params(kp, C)

    out = multi_head_self_attention(x, *params, n_head=n_head,
                                    compute_dtype=jnp.float32)
    out = jax.block_until_ready(out)
    ref = _reference(x, *params, n_head)
    assert out.shape == (B, T, C)
    assert jnp.allclose(out, ref, atol=5e-3, rtol=5e-3), "f32 path mismatch"

    # --- Run B: default bf16 fast path, multi query tile (nq=2, K/V reuse) --
    B2, T2, C2, H2 = 2, 256, 128, 4      # lane-dense; exercises pl.when + scratch
    kx2, kp2 = jax.random.split(jax.random.PRNGKey(1))
    x2 = jax.random.normal(kx2, (B2, T2, C2), jnp.float32)
    params2 = _init_params(kp2, C2)

    out2 = multi_head_self_attention(x2, *params2, n_head=H2, tq=128)
    out2 = jax.block_until_ready(out2)
    ref2 = _reference(x2, *params2, H2)
    assert out2.shape == (B2, T2, C2)
    assert jnp.allclose(out2, ref2, atol=2e-2, rtol=2e-2), "bf16 path mismatch"

    print("KERNEL_OK")
</pallas_src>

<mosaic_0001>
module attributes {stable_mosaic.version = 11 : i64} {
  func.func @_mhsa_kernel(%arg0: i32, %arg1: i32, %arg2: memref<1x8x32xf32, #tpu.memory_space<vmem>>, %arg3: memref<32x32xf32, #tpu.memory_space<vmem>>, %arg4: memref<1x32xf32, #tpu.memory_space<vmem>>, %arg5: memref<32x32xf32, #tpu.memory_space<vmem>>, %arg6: memref<1x32xf32, #tpu.memory_space<vmem>>, %arg7: memref<32x32xf32, #tpu.memory_space<vmem>>, %arg8: memref<1x32xf32, #tpu.memory_space<vmem>>, %arg9: memref<32x32xf32, #tpu.memory_space<vmem>>, %arg10: memref<1x32xf32, #tpu.memory_space<vmem>>, %arg11: memref<1x8x32xf32, #tpu.memory_space<vmem>>, %arg12: memref<8x32xf32, #tpu.memory_space<vmem>>, %arg13: memref<8x32xf32, #tpu.memory_space<vmem>>) attributes {dimension_semantics = [#tpu.dimension_semantics<parallel>, #tpu.dimension_semantics<arbitrary>], iteration_bounds = array<i64: 2, 1>, scalar_prefetch = 0 : i64, scratch_operands = 2 : i64, tpu.core_type = #tpu.core_type<tc>, window_params = [{transform_indices = @transform_0, window_bounds = array<i64: 1, 8, 32>}, {pipeline_mode = #tpu.pipeline_mode<synchronous>, transform_indices = @transform_1, window_bounds = array<i64: 32, 32>}, {pipeline_mode = #tpu.pipeline_mode<synchronous>, transform_indices = @transform_2, window_bounds = array<i64: 1, 32>}, {pipeline_mode = #tpu.pipeline_mode<synchronous>, transform_indices = @transform_3, window_bounds = array<i64: 32, 32>}, {pipeline_mode = #tpu.pipeline_mode<synchronous>, transform_indices = @transform_4, window_bounds = array<i64: 1, 32>}, {pipeline_mode = #tpu.pipeline_mode<synchronous>, transform_indices = @transform_5, window_bounds = array<i64: 32, 32>}, {pipeline_mode = #tpu.pipeline_mode<synchronous>, transform_indices = @transform_6, window_bounds = array<i64: 1, 32>}, {pipeline_mode = #tpu.pipeline_mode<synchronous>, transform_indices = @transform_7, window_bounds = array<i64: 32, 32>}, {pipeline_mode = #tpu.pipeline_mode<synchronous>, transform_indices = @transform_8, window_bounds = array<i64: 1, 32>}, {transform_indices = @transform_9, window_bounds = array<i64: 1, 8, 32>}]} {
    %c0 = arith.constant 0 : index
    %c0_0 = arith.constant 0 : index
    %c0_1 = arith.constant 0 : index
    %0 = vector.load %arg2[%c0, %c0_0, %c0_1] : memref<1x8x32xf32, #tpu.memory_space<vmem>>, vector<1x8x32xf32>
    %1 = vector.shape_cast %0 : vector<1x8x32xf32> to vector<8x32xf32>
    %c0_i32 = arith.constant 0 : i32
    %2 = arith.cmpi eq, %arg1, %c0_i32 : i32
    %3 = arith.extui %2 : i1 to i32
    %c0_i32_2 = arith.constant 0 : i32
    %4 = arith.cmpi ne, %3, %c0_i32_2 : i32
    scf.if %4 {
      %c0_54 = arith.constant 0 : index
      %c0_55 = arith.constant 0 : index
      %89 = vector.load %arg5[%c0_54, %c0_55] : memref<32x32xf32, #tpu.memory_space<vmem>>, vector<32x32xf32>
      %cst_56 = arith.constant dense<0.000000e+00> : vector<8x32xf32>
      %90 = tpu.matmul %1, %89, %cst_56 {dimension_numbers = #tpu.dot_dimension_numbers<[1], [0], [0], [1], [0, 0, 1, 1], [], []>} : vector<8x32xf32>, vector<32x32xf32>, vector<8x32xf32> -> vector<8x32xf32>
      %c0_57 = arith.constant 0 : index
      %c0_58 = arith.constant 0 : index
      %91 = vector.load %arg6[%c0_57, %c0_58] : memref<1x32xf32, #tpu.memory_space<vmem>>, vector<1x32xf32>
      %92 = vector.broadcast %91 : vector<1x32xf32> to vector<8x32xf32>
      %93 = arith.addf %90, %92 : vector<8x32xf32>
      %c0_59 = arith.constant 0 : index
      %c0_60 = arith.constant 0 : index
      %94 = vector.load %arg7[%c0_59, %c0_60] : memref<32x32xf32, #tpu.memory_space<vmem>>, vector<32x32xf32>
      %cst_61 = arith.constant dense<0.000000e+00> : vector<8x32xf32>
      %95 = tpu.matmul %1, %94, %cst_61 {dimension_numbers = #tpu.dot_dimension_numbers<[1], [0], [0], [1], [0, 0, 1, 1], [], []>} : vector<8x32xf32>, vector<32x32xf32>, vector<8x32xf32> -> vector<8x32xf32>
      %c0_62 = arith.constant 0 : index
      %c0_63 = arith.constant 0 : index
      %96 = vector.load %arg8[%c0_62, %c0_63] : memref<1x32xf32, #tpu.memory_space<vmem>>, vector<1x32xf32>
      %97 = vector.broadcast %96 : vector<1x32xf32> to vector<8x32xf32>
      %98 = arith.addf %95, %97 : vector<8x32xf32>
      %c0_64 = arith.constant 0 : index
      %c0_65 = arith.constant 0 : index
      %99 = vector.load %arg12[%c0_64, %c0_65] : memref<8x32xf32, #tpu.memory_space<vmem>>, vector<8x32xf32>
      tpu.vector_store %arg12[%c0_64, %c0_65], %93 {strides = array<i32>} : memref<8x32xf32, #tpu.memory_space<vmem>>, vector<8x32xf32>,
      %c0_66 = arith.constant 0 : index
      %c0_67 = arith.constant 0 : index
      %100 = vector.load %arg13[%c0_66, %c0_67] : memref<8x32xf32, #tpu.memory_space<vmem>>, vector<8x32xf32>
      tpu.vector_store %arg13[%c0_66, %c0_67], %98 {strides = array<i32>} : memref<8x32xf32, #tpu.memory_space<vmem>>, vector<8x32xf32>,
    } else {
    }
    %c0_3 = arith.constant 0 : index
    %c0_4 = arith.constant 0 : index
    %5 = vector.load %arg3[%c0_3, %c0_4] : memref<32x32xf32, #tpu.memory_space<vmem>>, vector<32x32xf32>
    %cst = arith.constant dense<0.000000e+00> : vector<8x32xf32>
    %6 = tpu.matmul %1, %5, %cst {dimension_numbers = #tpu.dot_dimension_numbers<[1], [0], [0], [1], [0, 0, 1, 1], [], []>} : vector<8x32xf32>, vector<32x32xf32>, vector<8x32xf32> -> vector<8x32xf32>
    %c0_5 = arith.constant 0 : index
    %c0_6 = arith.constant 0 : index
    %7 = vector.load %arg4[%c0_5, %c0_6] : memref<1x32xf32, #tpu.memory_space<vmem>>, vector<1x32xf32>
    %8 = vector.broadcast %7 : vector<1x32xf32> to vector<8x32xf32>
    %9 = arith.addf %6, %8 : vector<8x32xf32>
    %cst_7 = arith.constant 0.000000e+00 : f32
    %10 = vector.broadcast %cst_7 : f32 to vector<8x32xf32>
    %11 = vector.extract_strided_slice %9 {offsets = [0, 0], sizes = [8, 8], strides = [1, 1]} : vector<8x32xf32> to vector<8x8xf32>
    %c0_8 = arith.constant 0 : index
    %c0_9 = arith.constant 0 : index
    %12 = vector.load %arg12[%c0_8, %c0_9] : memref<8x32xf32, #tpu.memory_space<vmem>>, vector<8x8xf32>
    %c0_10 = arith.constant 0 : index
    %c0_11 = arith.constant 0 : index
    %13 = vector.load %arg13[%c0_10, %c0_11] : memref<8x32xf32, #tpu.memory_space<vmem>>, vector<8x8xf32>
    %cst_12 = arith.constant dense<0.000000e+00> : vector<8x8xf32>
    %14 = tpu.matmul %11, %12, %cst_12 {dimension_numbers = #tpu.dot_dimension_numbers<[1], [1], [0], [0], [0, 0, 1, 0], [], []>} : vector<8x8xf32>, vector<8x8xf32>, vector<8x8xf32> -> vector<8x8xf32>
    %cst_13 = arith.constant dense<0xFF800000> : vector<8xf32>
    %15 = vector.multi_reduction <maximumf>, %14, %cst_13 [1] : vector<8x8xf32> to vector<8xf32>
    %16 = vector.shape_cast %15 : vector<8xf32> to vector<8x1xf32>
    %17 = vector.broadcast %16 : vector<8x1xf32> to vector<8x8xf32>
    %18 = arith.subf %14, %17 : vector<8x8xf32>
    %19 = math.exp %18 : vector<8x8xf32>
    %cst_14 = arith.constant dense<0.000000e+00> : vector<8xf32>
    %20 = vector.multi_reduction <add>, %19, %cst_14 [1] : vector<8x8xf32> to vector<8xf32>
    %21 = vector.shape_cast %20 : vector<8xf32> to vector<8x1xf32>
    %22 = tpu.reciprocal %21 {approx = true} : vector<8x1xf32> -> vector<8x1xf32>
    %23 = vector.broadcast %22 : vector<8x1xf32> to vector<8x8xf32>
    %24 = arith.mulf %19, %23 : vector<8x8xf32>
    %cst_15 = arith.constant dense<0.000000e+00> : vector<8x8xf32>
    %25 = tpu.matmul %24, %13, %cst_15 {dimension_numbers = #tpu.dot_dimension_numbers<[1], [0], [0], [1], [0, 0, 1, 1], [], []>} : vector<8x8xf32>, vector<8x8xf32>, vector<8x8xf32> -> vector<8x8xf32>
    %c0_16 = arith.constant 0 : index
    %c0_17 = arith.constant 0 : index
    %26 = vector.load %arg9[%c0_16, %c0_17] : memref<32x32xf32, #tpu.memory_space<vmem>>, vector<8x32xf32>
    %cst_18 = arith.constant dense<0.000000e+00> : vector<8x32xf32>
    %27 = tpu.matmul %25, %26, %cst_18 {dimension_numbers = #tpu.dot_dimension_numbers<[1], [0], [0], [1], [0, 0, 1, 1], [], []>} : vector<8x8xf32>, vector<8x32xf32>, vector<8x32xf32> -> vector<8x32xf32>
    %28 = arith.addf %10, %27 : vector<8x32xf32>
    %29 = vector.extract_strided_slice %9 {offsets = [0, 8], sizes = [8, 8], strides = [1, 1]} : vector<8x32xf32> to vector<8x8xf32>
    %c0_19 = arith.constant 0 : index
    %c8 = arith.constant 8 : index
    %30 = vector.load %arg12[%c0_19, %c8] : memref<8x32xf32, #tpu.memory_space<vmem>>, vector<8x8xf32>
    %c0_20 = arith.constant 0 : index
    %c8_21 = arith.constant 8 : index
    %31 = vector.load %arg13[%c0_20, %c8_21] : memref<8x32xf32, #tpu.memory_space<vmem>>, vector<8x8xf32>
    %cst_22 = arith.constant dense<0.000000e+00> : vector<8x8xf32>
    %32 = tpu.matmul %29, %30, %cst_22 {dimension_numbers = #tpu.dot_dimension_numbers<[1], [1], [0], [0], [0, 0, 1, 0], [], []>} : vector<8x8xf32>, vector<8x8xf32>, vector<8x8xf32> -> vector<8x8xf32>
    %cst_23 = arith.constant dense<0xFF800000> : vector<8xf32>
    %33 = vector.multi_reduction <maximumf>, %32, %cst_23 [1] : vector<8x8xf32> to vector<8xf32>
    %34 = vector.shape_cast %33 : vector<8xf32> to vector<8x1xf32>
    %35 = vector.broadcast %34 : vector<8x1xf32> to vector<8x8xf32>
    %36 = arith.subf %32, %35 : vector<8x8xf32>
    %37 = math.exp %36 : vector<8x8xf32>
    %cst_24 = arith.constant dense<0.000000e+00> : vector<8xf32>
    %38 = vector.multi_reduction <add>, %37, %cst_24 [1] : vector<8x8xf32> to vector<8xf32>
    %39 = vector.shape_cast %38 : vector<8xf32> to vector<8x1xf32>
    %40 = tpu.reciprocal %39 {approx = true} : vector<8x1xf32> -> vector<8x1xf32>
    %41 = vector.broadcast %40 : vector<8x1xf32> to vector<8x8xf32>
    %42 = arith.mulf %37, %41 : vector<8x8xf32>
    %cst_25 = arith.constant dense<0.000000e+00> : vector<8x8xf32>
    %43 = tpu.matmul %42, %31, %cst_25 {dimension_numbers = #tpu.dot_dimension_numbers<[1], [0], [0], [1], [0, 0, 1, 1], [], []>} : vector<8x8xf32>, vector<8x8xf32>, vector<8x8xf32> -> vector<8x8xf32>
    %c8_26 = arith.constant 8 : index
    %c0_27 = arith.constant 0 : index
    %44 = vector.load %arg9[%c8_26, %c0_27] : memref<32x32xf32, #tpu.memory_space<vmem>>, vector<8x32xf32>
    %cst_28 = arith.constant dense<0.000000e+00> : vector<8x32xf32>
    %45 = tpu.matmul %43, %44, %cst_28 {dimension_numbers = #tpu.dot_dimension_numbers<[1], [0], [0], [1], [0, 0, 1, 1], [], []>} : vector<8x8xf32>, vector<8x32xf32>, vector<8x32xf32> -> vector<8x32xf32>
    %46 = arith.addf %28, %45 : vector<8x32xf32>
    %47 = vector.extract_strided_slice %9 {offsets = [0, 16], sizes = [8, 8], strides = [1, 1]} : vector<8x32xf32> to vector<8x8xf32>
    %c0_29 = arith.constant 0 : index
    %c16 = arith.constant 16 : index
    %48 = vector.load %arg12[%c0_29, %c16] : memref<8x32xf32, #tpu.memory_space<vmem>>, vector<8x8xf32>
    %c0_30 = arith.constant 0 : index
    %c16_31 = arith.constant 16 : index
    %49 = vector.load %arg13[%c0_30, %c16_31] : memref<8x32xf32, #tpu.memory_space<vmem>>, vector<8x8xf32>
    %cst_32 = arith.constant dense<0.000000e+00> : vector<8x8xf32>
    %50 = tpu.matmul %47, %48, %cst_32 {dimension_numbers = #tpu.dot_dimension_numbers<[1], [1], [0], [0], [0, 0, 1, 0], [], []>} : vector<8x8xf32>, vector<8x8xf32>, vector<8x8xf32> -> vector<8x8xf32>
    %cst_33 = arith.constant dense<0xFF800000> : vector<8xf32>
    %51 = vector.multi_reduction <maximumf>, %50, %cst_33 [1] : vector<8x8xf32> to vector<8xf32>
    %52 = vector.shape_cast %51 : vector<8xf32> to vector<8x1xf32>
    %53 = vector.broadcast %52 : vector<8x1xf32> to vector<8x8xf32>
    %54 = arith.subf %50, %53 : vector<8x8xf32>
    %55 = math.exp %54 : vector<8x8xf32>
    %cst_34 = arith.constant dense<0.000000e+00> : vector<8xf32>
    %56 = vector.multi_reduction <add>, %55, %cst_34 [1] : vector<8x8xf32> to vector<8xf32>
    %57 = vector.shape_cast %56 : vector<8xf32> to vector<8x1xf32>
    %58 = tpu.reciprocal %57 {approx = true} : vector<8x1xf32> -> vector<8x1xf32>
    %59 = vector.broadcast %58 : vector<8x1xf32> to vector<8x8xf32>
    %60 = arith.mulf %55, %59 : vector<8x8xf32>
    %cst_35 = arith.constant dense<0.000000e+00> : vector<8x8xf32>
    %61 = tpu.matmul %60, %49, %cst_35 {dimension_numbers = #tpu.dot_dimension_numbers<[1], [0], [0], [1], [0, 0, 1, 1], [], []>} : vector<8x8xf32>, vector<8x8xf32>, vector<8x8xf32> -> vector<8x8xf32>
    %c16_36 = arith.constant 16 : index
    %c0_37 = arith.constant 0 : index
    %62 = vector.load %arg9[%c16_36, %c0_37] : memref<32x32xf32, #tpu.memory_space<vmem>>, vector<8x32xf32>
    %cst_38 = arith.constant dense<0.000000e+00> : vector<8x32xf32>
    %63 = tpu.matmul %61, %62, %cst_38 {dimension_numbers = #tpu.dot_dimension_numbers<[1], [0], [0], [1], [0, 0, 1, 1], [], []>} : vector<8x8xf32>, vector<8x32xf32>, vector<8x32xf32> -> vector<8x32xf32>
    %64 = arith.addf %46, %63 : vector<8x32xf32>
    %65 = vector.extract_strided_slice %9 {offsets = [0, 24], sizes = [8, 8], strides = [1, 1]} : vector<8x32xf32> to vector<8x8xf32>
    %c0_39 = arith.constant 0 : index
    %c24 = arith.constant 24 : index
    %66 = vector.load %arg12[%c0_39, %c24] : memref<8x32xf32, #tpu.memory_space<vmem>>, vector<8x8xf32>
    %c0_40 = arith.constant 0 : index
    %c24_41 = arith.constant 24 : index
    %67 = vector.load %arg13[%c0_40, %c24_41] : memref<8x32xf32, #tpu.memory_space<vmem>>, vector<8x8xf32>
    %cst_42 = arith.constant dense<0.000000e+00> : vector<8x8xf32>
    %68 = tpu.matmul %65, %66, %cst_42 {dimension_numbers = #tpu.dot_dimension_numbers<[1], [1], [0], [0], [0, 0, 1, 0], [], []>} : vector<8x8xf32>, vector<8x8xf32>, vector<8x8xf32> -> vector<8x8xf32>
    %cst_43 = arith.constant dense<0xFF800000> : vector<8xf32>
    %69 = vector.multi_reduction <maximumf>, %68, %cst_43 [1] : vector<8x8xf32> to vector<8xf32>
    %70 = vector.shape_cast %69 : vector<8xf32> to vector<8x1xf32>
    %71 = vector.broadcast %70 : vector<8x1xf32> to vector<8x8xf32>
    %72 = arith.subf %68, %71 : vector<8x8xf32>
    %73 = math.exp %72 : vector<8x8xf32>
    %cst_44 = arith.constant dense<0.000000e+00> : vector<8xf32>
    %74 = vector.multi_reduction <add>, %73, %cst_44 [1] : vector<8x8xf32> to vector<8xf32>
    %75 = vector.shape_cast %74 : vector<8xf32> to vector<8x1xf32>
    %76 = tpu.reciprocal %75 {approx = true} : vector<8x1xf32> -> vector<8x1xf32>
    %77 = vector.broadcast %76 : vector<8x1xf32> to vector<8x8xf32>
    %78 = arith.mulf %73, %77 : vector<8x8xf32>
    %cst_45 = arith.constant dense<0.000000e+00> : vector<8x8xf32>
    %79 = tpu.matmul %78, %67, %cst_45 {dimension_numbers = #tpu.dot_dimension_numbers<[1], [0], [0], [1], [0, 0, 1, 1], [], []>} : vector<8x8xf32>, vector<8x8xf32>, vector<8x8xf32> -> vector<8x8xf32>
    %c24_46 = arith.constant 24 : index
    %c0_47 = arith.constant 0 : index
    %80 = vector.load %arg9[%c24_46, %c0_47] : memref<32x32xf32, #tpu.memory_space<vmem>>, vector<8x32xf32>
    %cst_48 = arith.constant dense<0.000000e+00> : vector<8x32xf32>
    %81 = tpu.matmul %79, %80, %cst_48 {dimension_numbers = #tpu.dot_dimension_numbers<[1], [0], [0], [1], [0, 0, 1, 1], [], []>} : vector<8x8xf32>, vector<8x32xf32>, vector<8x32xf32> -> vector<8x32xf32>
    %82 = arith.addf %64, %81 : vector<8x32xf32>
    %c0_49 = arith.constant 0 : index
    %c0_50 = arith.constant 0 : index
    %83 = vector.load %arg10[%c0_49, %c0_50] : memref<1x32xf32, #tpu.memory_space<vmem>>, vector<1x32xf32>
    %84 = vector.broadcast %83 : vector<1x32xf32> to vector<8x32xf32>
    %85 = arith.addf %82, %84 : vector<8x32xf32>
    %c0_51 = arith.constant 0 : index
    %c0_52 = arith.constant 0 : index
    %c0_53 = arith.constant 0 : index
    %86 = vector.load %arg11[%c0_51, %c0_52, %c0_53] : memref<1x8x32xf32, #tpu.memory_space<vmem>>, vector<1x8x32xf32>
    %87 = vector.shape_cast %86 : vector<1x8x32xf32> to vector<8x32xf32>
    %88 = vector.shape_cast %85 : vector<8x32xf32> to vector<1x8x32xf32>
    tpu.vector_store %arg11[%c0_51, %c0_52, %c0_53], %88 {strides = array<i32>} : memref<1x8x32xf32, #tpu.memory_space<vmem>>, vector<1x8x32xf32>,
    return
  }
  func.func @transform_0(%arg0: i32, %arg1: i32) -> (i32, i32, i32) {
    %c0_i32 = arith.constant 0 : i32
    %c0_i32_0 = arith.constant 0 : i32
    %c0_i32_1 = arith.constant 0 : i32
    return %arg0, %c0_i32, %c0_i32_0 : i32, i32, i32
  }
  func.func @transform_1(%arg0: i32, %arg1: i32) -> (i32, i32) {
    %c0_i32 = arith.constant 0 : i32
    %c0_i32_0 = arith.constant 0 : i32
    %c0_i32_1 = arith.constant 0 : i32
    return %c0_i32, %c0_i32_0 : i32, i32
  }
  func.func @transform_2(%arg0: i32, %arg1: i32) -> (i32, i32) {
    %c0_i32 = arith.constant 0 : i32
    %c0_i32_0 = arith.constant 0 : i32
    %c0_i32_1 = arith.constant 0 : i32
    return %c0_i32, %c0_i32_0 : i32, i32
  }
  func.func @transform_3(%arg0: i32, %arg1: i32) -> (i32, i32) {
    %c0_i32 = arith.constant 0 : i32
    %c0_i32_0 = arith.constant 0 : i32
    %c0_i32_1 = arith.constant 0 : i32
    return %c0_i32, %c0_i32_0 : i32, i32
  }
  func.func @transform_4(%arg0: i32, %arg1: i32) -> (i32, i32) {
    %c0_i32 = arith.constant 0 : i32
    %c0_i32_0 = arith.constant 0 : i32
    %c0_i32_1 = arith.constant 0 : i32
    return %c0_i32, %c0_i32_0 : i32, i32
  }
  func.func @transform_5(%arg0: i32, %arg1: i32) -> (i32, i32) {
    %c0_i32 = arith.constant 0 : i32
    %c0_i32_0 = arith.constant 0 : i32
    %c0_i32_1 = arith.constant 0 : i32
    return %c0_i32, %c0_i32_0 : i32, i32
  }
  func.func @transform_6(%arg0: i32, %arg1: i32) -> (i32, i32) {
    %c0_i32 = arith.constant 0 : i32
    %c0_i32_0 = arith.constant 0 : i32
    %c0_i32_1 = arith.constant 0 : i32
    return %c0_i32, %c0_i32_0 : i32, i32
  }
  func.func @transform_7(%arg0: i32, %arg1: i32) -> (i32, i32) {
    %c0_i32 = arith.constant 0 : i32
    %c0_i32_0 = arith.constant 0 : i32
    %c0_i32_1 = arith.constant 0 : i32
    return %c0_i32, %c0_i32_0 : i32, i32
  }
  func.func @transform_8(%arg0: i32, %arg1: i32) -> (i32, i32) {
    %c0_i32 = arith.constant 0 : i32
    %c0_i32_0 = arith.constant 0 : i32
    %c0_i32_1 = arith.constant 0 : i32
    return %c0_i32, %c0_i32_0 : i32, i32
  }
  func.func @transform_9(%arg0: i32, %arg1: i32) -> (i32, i32, i32) {
    %c0_i32 = arith.constant 0 : i32
    %c0_i32_0 = arith.constant 0 : i32
    return %arg0, %arg1, %c0_i32 : i32, i32, i32
  }
}

</mosaic_0001>

<bundles_post_ra>
// kernel: tpu_custom_call.1
= control target key start
LH: loop header
LB: loop body
LE: loop exit
PB: predicated region body
PF: predicated region fallthrough
CT: control target
= control target key end

     0   :  { %s2808_s0 = inlined_call_operand.hbm [shape: f32[2,8,32], index: 0, kind: input, shape index: {}]   ;;  %s2809_s1 = inlined_call_operand.hbm [shape: f32[32,32], index: 1, kind: input, shape index: {}]   ;;  %s2810_s2 = inlined_call_operand.vmem [shape: f32[1,32], index: 2, kind: input, shape index: {}]   ;;  %s2811_s3 = inlined_call_operand.hbm [shape: f32[32,32], index: 3, kind: input, shape index: {}]   ;;  %s2812_s4 = inlined_call_operand.vmem [shape: f32[1,32], index: 4, kind: input, shape index: {}]   ;;  %s2813_s5 = inlined_call_operand.hbm [shape: f32[32,32], index: 5, kind: input, shape index: {}]   ;;  %s2814_s6 = inlined_call_operand.vmem [shape: f32[1,32], index: 6, kind: input, shape index: {}]   ;;  %s2815_s7 = inlined_call_operand.hbm [shape: f32[32,32], index: 7, kind: input, shape index: {}]   ;;  %s2816_s8 = inlined_call_operand.vmem [shape: f32[1,32], index: 8, kind: input, shape index: {}]   ;;  %s2817_s9 = inlined_call_operand.hbm [shape: f32[2,8,32], index: 9, kind: output, shape index: {}]  }
   0x1   :  { %2824 = sst [smem:[#allocation19_spill]] %s2809_s1 }
   0x2   :  { %2825 = sst [smem:[#allocation20_spill]] %s2816_s8 }
   0x3   :  { %2826 = sst [smem:[#allocation21_spill]] %s2817_s9 }
   0x4   :  { %14 = vsyncpa [#allocation5], 0 }
   0x5   :  { %16 = vsyncpa [#allocation5 + $0x1], 0 }
   0x6   :  { %17 = vsyncpa [#allocation8], 0 }
   0x7   :  { %18 = vsyncpa [#allocation11], 0 }
   0x8   :  { %19 = vsyncpa [#allocation6], 0 }
   0x9   :  { %21 = vsyncpa [#allocation6 + $0x1], 0  ;;  %s2395_s30 = smov 0   ;;  %s2397_s10 = smov 0  }
   0xa   :  { %s2399_s11 = smov 0   ;;  %s2401_s12 = smov 0  }
   0xb   :  { %s2403_s13 = smov 0   ;;  %s2405_s14 = smov 0  }
   0xc LB: > { %2827 = sst [smem:[#allocation18_spill]] %s2321_s12  ;;  %s2818_s15 = sadd.s32 4294967295, %s2329_s14   ;;  %s2329_s14 = sphi %s2405_s14, %s27_s14   ;;  %s2325_s13 = sphi %s2403_s13, %s2852_s13   ;;  %s2321_s12 = sphi %s2401_s12, %s2851_s12   ;;  %s2317_s11 = sphi %s2399_s11, %s2850_s11   ;;  %s2313_s10 = sphi %s2397_s10, %s2849_s10   ;;  %s2309_s30 = sphi %s2395_s30, %s2848_s30  }
   0xd   : > { %p1778_p0 = scmp.ge.s32.totalorder %s2329_s14, 1  ;;  %p2429_p1 = scmp.eq.s32.totalorder %s2818_s15, 0 }
   0xe   : > { %p266_p2 = scmp.lt.s32.totalorder %s2329_s14, 3  ;;  %s2331_s18 = smov [#allocation7]  }
   0xf   : > { %s2828_s16 = scalar_select %p2429_p1, 1, 0 }
  0x10   : > { %p2434_p3 = pnand %p1778_p0, %p266_p2  ;;  %s278_s19 = sshll.u32 %s2331_s18, 4  ;;  %s2438_s19 = int_to_ptr.vmem [resolvable:$true] %s278_s19 }
  0x11   : > { %s2332_s21 = smov [#allocation10]   ;;  %s2333_s23 = smov [#allocation9]  }
  0x12   : > { %s2829_s17 = scalar_select %p2434_p3, 1, 0 }
  0x13   : > { %p1990_p4 = pneg %p2434_p3  ;;  %s310_s22 = sshll.u32 %s2332_s21, 4  ;;  %s2449_s22 = int_to_ptr.vmem [resolvable:$true] %s310_s22 }
  0x14   : > { %s2451_s24 = sshll.u32 %s2333_s23, 4  ;;  %s2831_s1 = sld [smem:[#allocation19_spill]]  ;;  %s295_s24 = int_to_ptr.vmem [resolvable:$true] %s2451_s24 }
  0x15   : > { %p2445_p6 = pnand %p1990_p4, %p2429_p1 }
  0x17   : > { %p2461_p8 = pneg %p2445_p6 }
  0x1a   : > { %s2097_s27 = scalar_lea.hbm %s2831_s1, 512 }
  0x1b   : > { %p2098_p7 = scmp.ne.s32.totalorder %s2831_s1, %s2097_s27  ;;  %p2104_p11 = scmp.lt.u32.totalorder %s2097_s27, %s2831_s1 }
  0x1d   : > { %p2100_p9 = pnand %p2461_p8, %p2098_p7 }
  0x1f   : > { %p2101_p10 = pneg %p2100_p9 }
  0x21   : > { %p2106_p12 = pnand %p2104_p11, %p2101_p10 }
  0x23   : > { %2109 = shalt.err (!%p2106_p12)
}
  0x24   : > { %s2110_s25 = scalar_lea.vmem %s2438_s19, 512  ;;  %p2118_p4 = scmp.lt.s32.totalorder %s2438_s19, %s2438_s19 }
  0x25   : > { %p2111_p13 = scmp.ne.s32.totalorder %s2438_s19, %s2110_s25  ;;  %p2119_p5 = scmp.lt.s32.totalorder %s2110_s25, %s2110_s25 }
  0x27   : > { %p2113_p0 = pnand %p2111_p13, %p2461_p8  ;;  %p2120_p7 = por %p2119_p5, %p2118_p4 }
  0x29   : > { %p2114_p2 = pneg %p2113_p0 }
  0x2b   : > { %p2121_p9 = pnand %p2120_p7, %p2114_p2 }
  0x2d   : > { %2124 = shalt.err (!%p2121_p9)
}
  0x2e   : > { %s2334_s26 = smov 128   ;;  %s2335_s27 = smov 8  }
  0x2f   : > { %1993 = dma.hbm_to_vmem [thread:$0]  (!%p2445_p6), %s2831_s1, 512, %s2438_s19, [#allocation8], %s2334_s26, %s2334_s26, %s2335_s27  }
  0x30   : > { %s2125_s25 = scalar_lea.hbm %s2813_s5, 512 }
  0x31   : > { %p2126_p5 = scmp.ne.s32.totalorder %s2813_s5, %s2125_s25  ;;  %p2132_p12 = scmp.lt.u32.totalorder %s2125_s25, %s2813_s5 }
  0x33   : > { %p2128_p10 = pnand %p2126_p5, %p2461_p8 }
  0x35   : > { %p2129_p11 = pneg %p2128_p10 }
  0x37   : > { %p2134_p13 = pnand %p2132_p12, %p2129_p11 }
  0x39   : > { %2137 = shalt.err (!%p2134_p13)
}
  0x3a   : > { %s2138_s19 = scalar_lea.vmem %s2449_s22, 512  ;;  %p2146_p7 = scmp.lt.s32.totalorder %s2449_s22, %s2449_s22 }
  0x3b   : > { %p2139_p0 = scmp.ne.s32.totalorder %s2449_s22, %s2138_s19  ;;  %p2147_p9 = scmp.lt.s32.totalorder %s2138_s19, %s2138_s19 }
  0x3d   : > { %p2141_p2 = pnand %p2139_p0, %p2461_p8  ;;  %p2148_p5 = por %p2147_p9, %p2146_p7 }
  0x3f   : > { %p2142_p4 = pneg %p2141_p2 }
  0x41   : > { %p2149_p10 = pnand %p2148_p5, %p2142_p4 }
  0x43   : > { %2152 = shalt.err (!%p2149_p10)
}
  0x44   : > { %1999 = dma.hbm_to_vmem [thread:$0]  (!%p2445_p6), %s2813_s5, 512, %s2449_s22, [#allocation11], %s2334_s26, %s2334_s26, %s2335_s27  }
  0x45   : > { %s2153_s28 = scalar_lea.hbm %s2811_s3, 512 }
  0x46   : > { %p2154_p11 = scmp.ne.s32.totalorder %s2811_s3, %s2153_s28  ;;  %p2160_p0 = scmp.lt.u32.totalorder %s2153_s28, %s2811_s3 }
  0x48   : > { %p2156_p12 = pnand %p2154_p11, %p2461_p8 }
  0x4a   : > { %p2157_p13 = pneg %p2156_p12 }
  0x4c   : > { %p2162_p2 = pnand %p2160_p0, %p2157_p13 }
  0x4e   : > { %2165 = shalt.err (!%p2162_p2)
}
  0x4f   : > { %s2166_s19 = scalar_lea.vmem %s295_s24, 512  ;;  %p2174_p5 = scmp.lt.s32.totalorder %s295_s24, %s295_s24 }
  0x50   : > { %p2167_p4 = scmp.ne.s32.totalorder %s295_s24, %s2166_s19  ;;  %p2175_p10 = scmp.lt.s32.totalorder %s2166_s19, %s2166_s19 }
  0x52   : > { %p2169_p7 = pnand %p2167_p4, %p2461_p8  ;;  %p2176_p3 = por %p2175_p10, %p2174_p5 }
  0x54   : > { %p2170_p9 = pneg %p2169_p7 }
  0x56   : > { %p2177_p1 = pnand %p2176_p3, %p2170_p9 }
  0x58   : > { %2180 = shalt.err (!%p2177_p1)
}
  0x59   : > { %1996 = dma.hbm_to_vmem [thread:$0]  (!%p2445_p6), %s2811_s3, 512, %s295_s24, [#allocation8], %s2334_s26, %s2334_s26, %s2335_s27  }
  0x5a   : > { %s2336_s9 = smov [#allocation12]   ;;  %s2181_s29 = scalar_lea.hbm %s2815_s7, 512 }
  0x5b   : > { %s326_s12 = sshll.u32 %s2336_s9, 4  ;;  %p2182_p1 = scmp.ne.s32.totalorder %s2815_s7, %s2181_s29  ;;  %s327_s12 = int_to_ptr.vmem [resolvable:$true] %s326_s12 }
  0x5c   : > { %p2188_p12 = scmp.lt.u32.totalorder %s2181_s29, %s2815_s7 }
  0x5d   : > { %p2184_p3 = pnand %p2182_p1, %p2461_p8 }
  0x5f   : > { %p2185_p11 = pneg %p2184_p3 }
  0x61   : > { %p2190_p13 = pnand %p2188_p12, %p2185_p11 }
  0x63   : > { %2193 = shalt.err (!%p2190_p13)
}
  0x64   : > { %s2194_s24 = scalar_lea.vmem %s327_s12, 512  ;;  %p2202_p7 = scmp.lt.s32.totalorder %s327_s12, %s327_s12 }
  0x65   : > { %p2195_p0 = scmp.ne.s32.totalorder %s327_s12, %s2194_s24  ;;  %p2203_p9 = scmp.lt.s32.totalorder %s2194_s24, %s2194_s24 }
  0x67   : > { %p2197_p2 = pnand %p2195_p0, %p2461_p8  ;;  %p2204_p5 = por %p2203_p9, %p2202_p7 }
  0x69   : > { %p2198_p4 = pneg %p2197_p2 }
  0x6b   : > { %p2205_p10 = pnand %p2204_p5, %p2198_p4 }
  0x6d   : > { %2208 = shalt.err (!%p2205_p10)
}
  0x6e   : > { %2002 = dma.hbm_to_vmem [thread:$0]  (!%p2445_p6), %s2815_s7, 512, %s327_s12, [#allocation11], %s2334_s26, %s2334_s26, %s2335_s27  }
  0x6f   : > { %s1777_s20 = sadd.s32 4294967294, %s2329_s14   ;;  %s39_s18 = sadd.s32 1, %s2325_s13 }
  0x70   : > { %p41_p8 = scmp.ge.s32.totalorder %s39_s18, 2  ;;  %s46_s9 = sadd.s32 1, %s2317_s11 }
  0x71   : > { %p53_p1 = scmp.ne.s32.totalorder %s2317_s11, %s2313_s10  ;;  %p54_p3 = scmp.eq.s32.totalorder %s2329_s14, 0 }
  0x72   : > { %s2854_s18 = smov (%p41_p8, %s39_s18), 0  ;;  %p59_p12 = scmp.ne.s32.totalorder %s2313_s10, %s2309_s30 }
  0x73   : > { %p2562_p11 = por %p54_p3, %p53_p1  ;;  %s43_s26 = ssub.s32 %s2325_s13, %s2854_s18 }
  0x74   : > { %s2834_s27 = sadd.s32 4294967295, %s2329_s14   ;;  %p44_p13 = scmp.eq.s32.totalorder %s43_s26, 0 }
  0x75   : > { %p253_p6 = scmp.eq.s32.totalorder %s2834_s27, 1  ;;  %p2835_p0 = scmp.ne.s32.totalorder %s2828_s16, 0 }
  0x76   : > { %p259_p7 = scmp.eq.s32.totalorder %s1777_s20, 1  ;;  %p2015_p5 = scmp.lt.s32.totalorder %s2329_s14, 2 }
  0x77   : > { %p2574_p2 = por %p2835_p0, %p59_p12  ;;  %p2578_p4 = por %p253_p6, %p53_p1 }
  0x78   : > { %s2583_s29 = scalar_select %p44_p13, %s2317_s11, %s46_s9  }
  0x79   : > { %s2837_s28 = scalar_select %p2578_p4, 1, 0 }
  0x7a   : > { %p2585_p9 = por %p259_p7, %p59_p12  ;;  %s343_s23 = sand.u32 1, %s2317_s11  }
  0x7b   : > { %s1785_s25 = sshll.u32 %s2325_s13, 7  ;;  %s1784_s19 = sshll.u32 %s343_s23, 3 }
  0x7c   : > { %s2838_s21 = scalar_select %p2585_p9, 1, 0 }
  0x7d   : > { %s2595_s8 = scalar_lea.hbm %s2808_s0, %s1785_s25  ;;  %s347_s20 = scalar_lea.vmem [#allocation4], %s1784_s19 }
  0x7e   : > { %s354_s9 = sshll.u32 %s347_s20, 4  ;;  %p2599_p10 = pnand %p2015_p5, %p2562_p11  ;;  %s2603_s9 = int_to_ptr.vmem [resolvable:$true] %s354_s9 }
  0x7f   : > { %s344_s27 = scalar_lea.sflag [#allocation5], %s343_s23  ;;  %s2209_s1 = scalar_lea.hbm %s2595_s8, 128 }
  0x80   : > { %p2210_p8 = scmp.ne.s32.totalorder %s2595_s8, %s2209_s1  ;;  %p2211_p1 = pneg %p2599_p10 }
  0x81   : > { %s2214_s15 = scalar_lea.hbm %s2808_s0, 256  ;;  %p2215_p11 = scmp.lt.u32.totalorder %s2595_s8, %s2808_s0 }
  0x82   : > { %p2212_p3 = pnand %p2211_p1, %p2210_p8  ;;  %p2216_p6 = scmp.lt.u32.totalorder %s2214_s15, %s2209_s1 }
  0x83   : > { %p2218_p0 = scmp.lt.u32.totalorder %s2209_s1, %s2595_s8 }
  0x84   : > { %p2213_p12 = pneg %p2212_p3  ;;  %p2217_p13 = por %p2216_p6, %p2215_p11 }
  0x86   : > { %p2219_p7 = por %p2218_p0, %p2217_p13 }
  0x88   : > { %p2220_p5 = pnand %p2219_p7, %p2213_p12 }
  0x8a   : > { %2223 = shalt.err (!%p2220_p5)
}
  0x8b   : > { %s2224_s23 = scalar_lea.vmem %s2603_s9, 128  ;;  %s2337_s20 = smov [#allocation4]  }
  0x8c   : > { %p2225_p8 = scmp.ne.s32.totalorder %s2603_s9, %s2224_s23  ;;  %s2229_s25 = sshll.u32 %s2337_s20, 4  ;;  %s2230_s25 = int_to_ptr.vmem [resolvable:$false] %s2229_s25 }
  0x8d   : > { %s2231_s19 = scalar_lea.vmem %s2230_s25, 256  ;;  %p2232_p4 = scmp.lt.s32.totalorder %s2603_s9, %s2230_s25 }
  0x8e   : > { %p2227_p3 = pnand %p2225_p8, %p2211_p1  ;;  %p2233_p11 = scmp.lt.s32.totalorder %s2231_s19, %s2224_s23 }
  0x90   : > { %p2228_p9 = pneg %p2227_p3  ;;  %p2234_p6 = por %p2233_p11, %p2232_p4 }
  0x92   : > { %p2235_p13 = pnand %p2234_p6, %p2228_p9 }
  0x94   : > { %2238 = shalt.err (!%p2235_p13)
}
  0x95   : > { %2006 = dma.hbm_to_vmem [thread:$0]  (!%p2599_p10), %s2595_s8, 128, %s2603_s9, %s344_s27  }
  0x96   : > { %p2840_p12 = scmp.ne.s32.totalorder %s2829_s17, 0 }
  0x97   : > { %s2633_s1 = sand.u32 (!%p2840_p12), 1, %s2313_s10  }
  0x98   : > { %363 = sbr.rel (%p2840_p12) target bundleno = 2757 (0xac5), region = 56  ;;  %s1787_s15 = sshll.u32 (!%p2840_p12), %s2633_s1, 3 }
  0x99   : > { %s366_s24 = scalar_lea.sflag (!%p2840_p12), [#allocation5], %s2633_s1  ;;  %s369_s22 = scalar_lea.vmem (!%p2840_p12), [#allocation4], %s1787_s15 }
  0x9f   : > { %2292 = dma.done.wait (%p2574_p2), %s366_s24, 128  }
  0xa0   : > { %2294 = vsyncadd (%p2574_p2), %s366_s24, 4294967168  ;;  %p2841_p4 = scmp.ne.s32.totalorder %s2828_s16, 0 }
  0xa2   : > { %2296 = dma.done.wait (%p2841_p4), [#allocation8], 1024  }
  0xa3   : > { %2298 = vsyncadd (%p2841_p4), [#allocation8], 4294966272 }
  0xa4   : > { %2300 = dma.done.wait (%p2841_p4), [#allocation11], 1024  }
  0xa5   : > { %2302 = vsyncadd (%p2841_p4), [#allocation11], 4294966272  ;;  %v2338_v0 = vmov 0.0|0.0   ;;  %vm2339_vm0 = vmmov 0   ;;  %v2340_v1 = vmov 0.0   ;;  %v425_v2 = vld [vmem:[#allocation9] sm:$0xff] }
  0xa6   : > { %1952 = vmatprep.subr.bf16.mxu0 %v2338_v0  ;;  %1867 = vmatprep.mubr.msk.f32.mxu0 %vm2339_vm0, %v2340_v1  ;;  %v426_v3 = vld [vmem:[#allocation9 + $0x8] sm:$0xff]  ;;  %v427_v4 = vld [vmem:[#allocation9 + $0x10] sm:$0xff]  ;;  %v428_v6 = vld [vmem:[#allocation9 + $0x18] sm:$0xff]  ;;  %vm436_vm1 = vcmask 261120   ;;  %vm680_vm2 = vcmask 64512   ;;  %s2341_s9 = smov 120  }
  0xa7   : > { %1958 = vmatprep.subr.bf16.mxu1 %v2338_v0  ;;  %1878 = vmatprep.mubr.msk.f32.mxu1 %vm2339_vm0, %v2340_v1  ;;  %v1953_v5 = vpack.c.bf16 %v426_v3, %v425_v2  ;;  %v1956_v7 = vpack.c.bf16 %v428_v6, %v427_v4  ;;  %v510_v8 = vld [vmem:[#allocation10] sm:$0xff]  ;;  %v511_v9 = vld [vmem:[#allocation10 + $0x8] sm:$0xff]  ;;  %v420_v13 = vld [vmem:[%s369_s22] sm:$0xff]  ;;  %s2342_s23 = smov 112   ;;  %s2343_s20 = smov 104  }
  0xa8   : > { %v593_v10 = vld [vmem:[#allocation7] sm:$0xff]  ;;  %v594_v11 = vld [vmem:[#allocation7 + $0x8] sm:$0xff]  ;;  %v1959_v12 = vpack.c.bf16 %v511_v9, %v510_v8  ;;  %v595_v15 = vld [vmem:[#allocation7 + $0x10] sm:$0xff]  ;;  %s2842_s25 = sld [smem:[#allocation18_spill]]  ;;  %s2843_s22 = sld [smem:[#allocation20_spill]] }
  0xa9   : > { %1954 = vmatpush3.bf16.msra.mxu0 %v1953_v5  ;;  %v1965_v14 = vpack.c.bf16 %v594_v11, %v593_v10  ;;  %v596_v16 = vld [vmem:[#allocation7 + $0x18] sm:$0xff]  ;;  %v512_v18 = vld [vmem:[#allocation10 + $0x10] sm:$0xff]  ;;  %v1793_v21 = vld [vmem:[%s2812_s4] ss:$0 sm:$0xff]  ;;  %s419_s17 = scalar_lea.vmem [#allocation13], %s1787_s15  ;;  %s2844_s26 = sld [smem:[#allocation21_spill]] }
  0xaa   : > { %1955 = vmatprep.subr.bf16.mxu0 %v2338_v0  ;;  %1960 = vmatpush3.bf16.msra.mxu1 %v1959_v12  ;;  %v1968_v17 = vpack.c.bf16 %v596_v16, %v595_v15  ;;  %v513_v19 = vld [vmem:[#allocation10 + $0x18] sm:$0xff]  ;;  %v1797_v25 = vld [vmem:[%s2810_s2] ss:$0 sm:$0xff]  ;;  %v1008_v56 = vld [vmem:[#allocation12 + $0x8] sm:$0xff]  ;;  %s1659_s12 = sshll.u32 %s419_s17, 4  ;;  %p2845_p9 = scmp.ne.s32.totalorder %s2837_s28, 0  ;;  %s2760_s12 = int_to_ptr.vmem [resolvable:$true] %s1659_s12 }
  0xab   : > { %1961 = vmatprep.subr.bf16.mxu1 %v2338_v0  ;;  %v1962_v20 = vpack.c.bf16 %v513_v19, %v512_v18  ;;  %v1795_v30 = vld [vmem:[%s2814_s6] ss:$0 sm:$0xff]  ;;  %s2344_s15 = smov [#allocation13]  }
  0xac   : > { %v841_v61 = vld [vmem:[#allocation12] sm:$0xff] }
  0xad   : > { %1957 = vmatpush3.bf16.msra.mxu0 %v1956_v7 }
  0xae   : > { %1964 = vmatprep.subr.bf16.mxu0 %v2338_v0  ;;  %1963 = vmatpush3.bf16.msra.mxu1 %v1962_v20  ;;  %s1817_s16 = sshll.u32 %s2842_s25, 7  ;;  %s2243_s25 = sshll.u32 %s2344_s15, 4  ;;  %s2244_s25 = int_to_ptr.vmem [resolvable:$false] %s2243_s25 }
  0xaf   : > { %1892 = vmatprep.subr.mxu1 %v2340_v1  ;;  %s2758_s27 = scalar_lea.hbm %s2844_s26, %s1817_s16  ;;  %s2245_s19 = scalar_lea.vmem %s2244_s25, 256 }
  0xb0   : > { %1868 = vmatmul.mubr.msk.f32.vlgmr.msra.gmra.mrb[0].mxu0 %vm436_vm1, %v420_v13  ;;  %p2246_p0 = scmp.lt.s32.totalorder %s2760_s12, %s2244_s25 }
  0xb1   : > { %1966 = vmatpush3.bf16.msra.mxu0 %v1965_v14  ;;  %1889 = vmatprep.mubr.msk.f32.mxu0 %vm2339_vm0, %v2340_v1 }
  0xb2   : > { %1967 = vmatprep.subr.bf16.mxu0 %v2338_v0  ;;  %1879 = vmatmul.mubr.msk.f32.vlgmr.msra.gmra.mrb[0].mxu1 %vm436_vm1, %v420_v13 }
  0xb3   : > { %1894 = vmatprep.mubr.msk.f32.mxu1 %vm2339_vm0, %v2340_v1 }
  0xb5   : > { %1969 = vmatpush3.bf16.msra.mxu0 %v1968_v17 }
  0xb6   : > { %1902 = vmatprep.subr.mxu0 %v2340_v1 }
  0xb8   : > { %1890 = vmatmul.mubr.msk.f32.vlgmr.msra.gmra.mrb[2].mxu0 %vm436_vm1, %v420_v13 }
  0xb9   : > { %1904 = vmatprep.mubr.msk.f32.mxu0 %vm2339_vm0, %v2340_v1 }
 0x183   : > { %v506_v22 = vpop.f32.mrb[0].mxu0 }
 0x184   : > { %v507_v23 = vadd.f32 %v1793_v21, %v506_v22  ;;  %v1869_v24 = vpop.f32.mrb[1].mxu0 }
 0x185   : > { %v587_v31 = vpop.f32.mrb[0].mxu1  ;;  %v1320_v24 = vld [vmem:[#allocation12 + $0x10] sm:$0xff] }
 0x186   : > { %591 = vst.msk [vmem:[#allocation2] sm:$0xff] %vm436_vm1, %v507_v23  ;;  %v588_v32 = vadd.f32 %v1795_v30, %v587_v31  ;;  %v1880_v33 = vpop.f32.mrb[1].mxu1 }
 0x188   : > { %592 = vst.msk [vmem:[#allocation3] sm:$0xff] %vm436_vm1, %v588_v32 }
 0x18b   : > { %v674_v26 = vpop.f32.mrb[2].mxu0 }
 0x18c   : > { %v1891_v27 = vpop.f32.mrb[3].mxu0  ;;  %v2673_v29 = vadd.f32 %v1797_v25, %v674_v26 }
 0x18d   : > { %v678_v28 = vld [vmem:[#allocation2] sm:$0xff] }
 0x18e   : > { %844 = vrot.lane.b32.xlu0 %v678_v28, %s2341_s9  ;;  %1893 = vmatpush3.xpose.msk.msra.mxu1 %vm680_vm2, %v678_v28 }
 0x18f   : > { %1897 = vmatprep.subr.mxu1 %v2340_v1  ;;  %v2693_v36 = vld [vmem:[#allocation3] sm:$0xff] }
 0x191   : > { %1895 = vmatmul.mubr.msk.f32.vlgmr.msra.gmra.mrb[2].mxu1 %vm680_vm2, %v2673_v29 }
 0x192   : > { %842 = vrot.lane.b32.xlu0 %v2673_v29, %s2341_s9  ;;  %1899 = vmatprep.mubr.msk.f32.mxu1 %vm2339_vm0, %v2340_v1 }
 0x193   : > { %1898 = vmatpush3.msra.mxu1 %v2693_v36 }
 0x194   : > { %1907 = vmatprep.subr.mxu1 %v2340_v1 }
 0x200   : > { %v845_v34 = vpop.permute.xlu0 %844 }
 0x201   : > { %1903 = vmatpush3.xpose.msk.msra.mxu0 %vm680_vm2, %v845_v34 }
 0x202   : > { %1912 = vmatprep.subr.mxu0 %v2340_v1 }
 0x204   : > { %v843_v35 = vpop.permute.xlu0 %842 }
 0x205   : > { %1905 = vmatmul.mubr.msk.f32.vlgmr.msra.gmra.mrb[4].mxu0 %vm680_vm2, %v843_v35  ;;  %v1560_v35 = vld [vmem:[#allocation12 + $0x18] sm:$0xff] }
 0x206   : > { %1914 = vmatprep.mubr.msk.f32.mxu0 %vm2339_vm0, %v2340_v1  ;;  %1913 = vmatpush3.msra.mxu0 %v1008_v56 }
 0x207   : > { %1922 = vmatprep.subr.mxu0 %v2340_v1 }
 0x264   : > { %v753_v37 = vpop.f32.mrb[2].mxu1 }
 0x265   : > { %v1896_v38 = vpop.f32.mrb[3].mxu1  ;;  %v757_v39 = vsel %vm680_vm2, %v753_v37, -inf }
 0x266   : > { %758 = vmax.xlane.f32.xlu1 %v757_v39 }
 0x2d8   : > { %v916_v40 = vpop.f32.mrb[4].mxu0 }
 0x2d9   : > { %v1906_v41 = vpop.f32.mrb[5].mxu0  ;;  %v920_v42 = vsel %vm680_vm2, %v916_v40, -inf }
 0x2da   : > { %921 = vmax.xlane.f32.xlu1 %v920_v42 }
 0x2f3   : > { %v759_v43 = vpop.xlane.xlu1 %758 }
 0x2f4   : > { %v760_v44 = vsub.f32 %v753_v37, %v759_v43 }
 0x2f6   : > { %v761_v45 = vmul.f32 1.442695, %v760_v44 }
 0x2f8   : > { %2081 = vpow2.f32 %v761_v45  ;;  %v1815_v45 = vld [vmem:[%s2843_s22] ss:$0 sm:$0xff] }
 0x302   : > { %v2082_v46 = vpop.eup %2081 }
 0x303   : > { %v763_v47 = vsel %vm680_vm2, %v2082_v46, 0.0 }
 0x304   : > { %764 = vadd.xlane.f32.xlu0 %v763_v47 }
 0x31a   : > { %1244 = vrot.lane.b32.xlu0 %v2693_v36, %s2342_s23 }
 0x31e   : > { %1397 = vrot.lane.b32.xlu0 %v678_v28, %s2343_s20 }
 0x367   : > { %v922_v48 = vpop.xlane.xlu1 %921 }
 0x368   : > { %v923_v49 = vsub.f32 %v916_v40, %v922_v48 }
 0x36a   : > { %v924_v50 = vmul.f32 1.442695, %v923_v49 }
 0x36c   : > { %2083 = vpow2.f32 %v924_v50 }
 0x376   : > { %v2084_v51 = vpop.eup %2083 }
 0x377   : > { %v926_v52 = vsel %vm680_vm2, %v2084_v51, 0.0 }
 0x378   : > { %927 = vadd.xlane.f32.xlu1 %v926_v52 }
 0x389   : > { %932 = vrot.lane.b32.xlu1 %v2693_v36, %s2341_s9 }
 0x38d   : > { %1157 = vrot.lane.b32.xlu1 %v678_v28, %s2342_s23 }
 0x391   : > { %v765_v53 = vpop.xlane.xlu0 %764  ;;  %1155 = vrot.lane.b32.xlu1 %v2673_v29, %s2342_s23  ;;  %s1645_s23 = scalar_lea.sflag [#allocation6], %s2633_s1 }
 0x392   : > { %2085 = vrcp.f32 %v765_v53 }
 0x395   : > { %v1245_v63 = vpop.permute.xlu0 %1244 }
 0x399   : > { %v1398_v19 = vpop.permute.xlu0 %1397 }
 0x39c   : > { %v2086_v54 = vpop.eup %2085 }
 0x39d   : > { %v767_v55 = vmul.f32 %v2086_v54, %v2082_v46 }
 0x39f   : > { %1900 = vmatmul.mubr.msk.f32.vlgmr.msra.gmra.mrb[4].mxu1 %vm680_vm2, %v767_v55 }
 0x3a0   : > { %1909 = vmatprep.mubr.msk.f32.mxu1 %vm2339_vm0, %v2340_v1 }
 0x405   : > { %v928_v57 = vpop.xlane.xlu1 %927 }
 0x406   : > { %2087 = vrcp.f32 %v928_v57 }
 0x409   : > { %v933_v58 = vpop.permute.xlu1 %932 }
 0x40a   : > { %1908 = vmatpush3.msra.mxu1 %v933_v58 }
 0x40b   : > { %1917 = vmatprep.subr.mxu1 %v2340_v1 }
 0x40d   : > { %v1158_v2 = vpop.permute.xlu1 %1157 }
 0x410   : > { %v2088_v59 = vpop.eup %2087 }
 0x411   : > { %v930_v60 = vmul.f32 %v2088_v59, %v2084_v51  ;;  %v1156_v5 = vpop.permute.xlu1 %1155 }
 0x413   : > { %1910 = vmatmul.mubr.msk.f32.vlgmr.msra.gmra.mrb[6].mxu1 %vm680_vm2, %v930_v60 }
 0x414   : > { %1918 = vmatpush3.msra.mxu1 %v841_v61  ;;  %1919 = vmatprep.mubr.msk.f32.mxu1 %vm2339_vm0, %v2340_v1 }
 0x415   : > { %1927 = vmatprep.subr.mxu1 %v2340_v1 }
 0x472   : > { %v837_v62 = vpop.f32.mrb[4].mxu1 }
 0x473   : > { %v1901_v0 = vpop.f32.mrb[5].mxu1  ;;  %1920 = vmatmul.mubr.msk.f32.vlgmr.msra.gmra.mrb[8].mxu1 %vm680_vm2, %v837_v62 }
 0x474   : > { %1928 = vmatpush3.msra.mxu1 %v1245_v63  ;;  %1929 = vmatprep.mubr.msk.f32.mxu1 %vm2339_vm0, %v2340_v1 }
 0x475   : > { %1937 = vmatprep.subr.mxu1 %v2340_v1 }
 0x4e6   : > { %v1004_v3 = vpop.f32.mrb[6].mxu1 }
 0x4e7   : > { %v1911_v4 = vpop.f32.mrb[7].mxu1  ;;  %1915 = vmatmul.mubr.msk.f32.vlgmr.msra.gmra.mrb[6].mxu0 %vm680_vm2, %v1004_v3 }
 0x4e8   : > { %1923 = vmatpush3.xpose.msk.msra.mxu0 %vm680_vm2, %v1158_v2  ;;  %1924 = vmatprep.mubr.msk.f32.mxu0 %vm2339_vm0, %v2340_v1 }
 0x4e9   : > { %1932 = vmatprep.subr.mxu0 %v2340_v1 }
 0x4eb   : > { %1925 = vmatmul.mubr.msk.f32.vlgmr.msra.gmra.mrb[8].mxu0 %vm680_vm2, %v1156_v5 }
 0x4ec   : > { %1934 = vmatprep.mubr.msk.f32.mxu0 %vm2339_vm0, %v2340_v1  ;;  %1933 = vmatpush3.msra.mxu0 %v1320_v24 }
 0x4ed   : > { %1942 = vmatprep.subr.mxu0 %v2340_v1 }
 0x546   : > { %v1151_v6 = vpop.f32.mrb[8].mxu1 }
 0x547   : > { %v1921_v7 = vpop.f32.mrb[9].mxu1 }
 0x5ba   : > { %v1078_v8 = vpop.f32.mrb[6].mxu0 }
 0x5bb   : > { %v1152_v9 = vadd.f32 %v1151_v6, %v1078_v8  ;;  %v1916_v10 = vpop.f32.mrb[7].mxu0 }
 0x5be   : > { %v1229_v11 = vpop.f32.mrb[8].mxu0 }
 0x5bf   : > { %v1926_v12 = vpop.f32.mrb[9].mxu0  ;;  %v1233_v13 = vsel %vm680_vm2, %v1229_v11, -inf }
 0x5c0   : > { %1234 = vmax.xlane.f32.xlu1 %v1233_v13 }
 0x64d   : > { %v1235_v14 = vpop.xlane.xlu1 %1234 }
 0x64e   : > { %v1236_v15 = vsub.f32 %v1229_v11, %v1235_v14 }
 0x650   : > { %v1237_v16 = vmul.f32 1.442695, %v1236_v15 }
 0x652   : > { %2089 = vpow2.f32 %v1237_v16 }
 0x65c   : > { %v2090_v17 = vpop.eup %2089 }
 0x65d   : > { %v1239_v18 = vsel %vm680_vm2, %v2090_v17, 0.0 }
 0x65e   : > { %1240 = vadd.xlane.f32.xlu0 %v1239_v18 }
 0x674   : > { %1395 = vrot.lane.b32.xlu0 %v2673_v29, %s2343_s20 }
 0x6eb   : > { %v1241_v20 = vpop.xlane.xlu0 %1240 }
 0x6ec   : > { %2091 = vrcp.f32 %v1241_v20 }
 0x6ef   : > { %v1396_v23 = vpop.permute.xlu0 %1395 }
 0x6f6   : > { %v2092_v21 = vpop.eup %2091 }
 0x6f7   : > { %v1243_v22 = vmul.f32 %v2092_v21, %v2090_v17 }
 0x6f9   : > { %1930 = vmatmul.mubr.msk.f32.vlgmr.msra.gmra.mrb[10].mxu1 %vm680_vm2, %v1243_v22 }
 0x6fa   : > { %1938 = vmatpush3.xpose.msk.msra.mxu1 %vm680_vm2, %v1398_v19  ;;  %1939 = vmatprep.mubr.msk.f32.mxu1 %vm2339_vm0, %v2340_v1 }
 0x6fb   : > { %1947 = vmatprep.subr.mxu1 %v2340_v1 }
 0x6fd   : > { %1940 = vmatmul.mubr.msk.f32.vlgmr.msra.gmra.mrb[12].mxu1 %vm680_vm2, %v1396_v23 }
 0x6fe   : > { %1949 = vmatprep.mubr.msk.f32.mxu1 %vm2339_vm0, %v2340_v1  ;;  %1948 = vmatpush3.msra.mxu1 %v1560_v35 }
 0x7cc   : > { %v1316_v25 = vpop.f32.mrb[10].mxu1 }
 0x7cd   : > { %v1931_v26 = vpop.f32.mrb[11].mxu1  ;;  %1935 = vmatmul.mubr.msk.f32.vlgmr.msra.gmra.mrb[10].mxu0 %vm680_vm2, %v1316_v25 }
 0x7ce   : > { %1944 = vmatprep.mubr.msk.f32.mxu0 %vm2339_vm0, %v2340_v1 }
 0x7d0   : > { %v1469_v27 = vpop.f32.mrb[12].mxu1 }
 0x7d1   : > { %v1941_v28 = vpop.f32.mrb[13].mxu1  ;;  %v1473_v29 = vsel %vm680_vm2, %v1469_v27, -inf }
 0x7d2   : > { %1474 = vmax.xlane.f32.xlu0 %v1473_v29 }
 0x85f   : > { %v1475_v30 = vpop.xlane.xlu0 %1474 }
 0x860   : > { %v1476_v31 = vsub.f32 %v1469_v27, %v1475_v30 }
 0x862   : > { %v1477_v32 = vmul.f32 1.442695, %v1476_v31 }
 0x864   : > { %2093 = vpow2.f32 %v1477_v32 }
 0x86e   : > { %v2094_v33 = vpop.eup %2093 }
 0x86f   : > { %v1479_v34 = vsel %vm680_vm2, %v2094_v33, 0.0 }
 0x870   : > { %1480 = vadd.xlane.f32.xlu1 %v1479_v34 }
 0x881   : > { %1484 = vrot.lane.b32.xlu1 %v2693_v36, %s2343_s20  ;;  %s2239_s20 = scalar_lea.vmem %s2760_s12, 128 }
 0x882   : > { %p2240_p2 = scmp.ne.s32.totalorder %s2760_s12, %s2239_s20  ;;  %p2247_p7 = scmp.lt.s32.totalorder %s2245_s19, %s2239_s20 }
 0x884   : > { %p2241_p10 = pnand %p2240_p2, %p2845_p9  ;;  %p2248_p5 = por %p2247_p7, %p2246_p0 }
 0x886   : > { %p2242_p1 = pneg %p2241_p10 }
 0x888   : > { %p2249_p8 = pnand %p2248_p5, %p2242_p1 }
 0x8a0   : > { %v1390_v1 = vpop.f32.mrb[10].mxu0 }
 0x8a1   : > { %v1394_v37 = vadd.f32 %v1390_v1, %v1152_v9  ;;  %v1936_v38 = vpop.f32.mrb[11].mxu0 }
 0x8fd   : > { %v1481_v39 = vpop.xlane.xlu1 %1480 }
 0x8fe   : > { %2095 = vrcp.f32 %v1481_v39 }
 0x901   : > { %v1485_v40 = vpop.permute.xlu1 %1484 }
 0x902   : > { %1943 = vmatpush3.msra.mxu0 %v1485_v40 }
 0x908   : > { %v2096_v41 = vpop.eup %2095 }
 0x909   : > { %v1483_v42 = vmul.f32 %v2096_v41, %v2094_v33 }
 0x90b   : > { %1945 = vmatmul.mubr.msk.f32.vlgmr.msra.gmra.mrb[12].mxu0 %vm680_vm2, %v1483_v42 }
 0x9de   : > { %v1556_v43 = vpop.f32.mrb[12].mxu0 }
 0x9df   : > { %v1946_v44 = vpop.f32.mrb[13].mxu0  ;;  %1950 = vmatmul.mubr.msk.f32.vlgmr.msra.gmra.mrb[14].mxu1 %vm680_vm2, %v1556_v43 }
 0xab2   : > { %v1630_v36 = vpop.f32.mrb[14].mxu1 }
 0xab3   : > { %v1634_v46 = vadd.f32 %v1630_v36, %v1394_v37  ;;  %v1951_v47 = vpop.f32.mrb[15].mxu1 }
 0xab5   : > { %v1642_v48 = vadd.f32 %v1815_v45, %v1634_v46 }
 0xab7   : > { %1643 = vst.msk [vmem:[%s419_s17] sm:$0xff] %vm436_vm1, %v1642_v48 }
 0xab8   : > { %2252 = shalt.err (!%p2249_p8)
}
 0xab9   : > { %s2253_s1 = scalar_lea.hbm %s2758_s27, 128  ;;  %s2257_s16 = scalar_lea.hbm %s2844_s26, 256 }
 0xaba   : > { %p2254_p3 = scmp.ne.s32.totalorder %s2758_s27, %s2253_s1  ;;  %p2258_p13 = scmp.lt.u32.totalorder %s2758_s27, %s2844_s26 }
 0xabb   : > { %p2259_p12 = scmp.lt.u32.totalorder %s2257_s16, %s2253_s1  ;;  %p2261_p2 = scmp.lt.u32.totalorder %s2253_s1, %s2758_s27 }
 0xabc   : > { %p2255_p11 = pnand %p2254_p3, %p2845_p9 }
 0xabd   : > { %p2260_p4 = por %p2259_p12, %p2258_p13 }
 0xabe   : > { %p2256_p6 = pneg %p2255_p11 }
 0xabf   : > { %p2262_p10 = por %p2261_p2, %p2260_p4 }
 0xac1   : > { %p2263_p1 = pnand %p2262_p10, %p2256_p6 }
 0xac3   : > { %2266 = shalt.err (!%p2263_p1)
}
 0xac4   : > { %1988 = dma.vmem_to_hbm [thread:$0]  (%p2845_p9), %s2760_s12, 128, %s2758_s27, %s1645_s23  }
 0xac5 PF: > { %s1671_s9 = sand.u32 1, %s2309_s30   ;;  %p2846_p0 = scmp.ne.s32.totalorder %s2838_s21, 0 }
 0xac6   : > { %p2847_p7 = scmp.ge.s32.totalorder %s2329_s14, 2  ;;  %s1672_s20 = scalar_lea.sflag [#allocation6], %s1671_s9 }
 0xac8   : > { %p2008_p5 = pnand %p2847_p7, %p2846_p0 }
 0xaca   : > { %2304 = dma.done.wait (!%p2008_p5), %s1672_s20, 128  }
 0xacb   : > { %2306 = vsyncadd (!%p2008_p5), %s1672_s20, 4294967168  ;;  %s27_s14 = sadd.s32 1, %s2329_s14   ;;  %s2848_s30 = smov %s2313_s10 }
 0xacc   : > { %p24_p8 = scmp.ge.s32.totalorder %s27_s14, 4   ;;  %s2849_s10 = smov %s2317_s11 }
 0xacd   : > { %s2850_s11 = smov %s2583_s29  ;;  %s2851_s12 = smov %s2325_s13 }
 0xace   : > { %s2852_s13 = smov %s2854_s18  ;;  %26 = sbr.rel (!%p24_p8) target bundleno = 12 (0xc), region = 121 }
 0xad5   :  { %1677 = vsyncpa [#allocation5], 1 }
 0xad6   :  { %1679 = vsyncpa [#allocation5 + $0x1], 1 }
 0xad7   :  { %1680 = vsyncpa [#allocation8], 1 }
 0xad8   :  { %1681 = vsyncpa [#allocation11], 1 }
 0xad9   :  { %1682 = vsyncpa [#allocation6], 1 }
 0xada   :  { %1684 = vsyncpa [#allocation6 + $0x1], 1 }

</bundles_post_ra>
